<compile_context>
chip_gen: v5e
topology: v5e:2x2
jax: 0.10.0
libtpu: 0.0.40
codegen_flags: <defaults>
</compile_context>

<pallas_src>
import functools
import math

import jax
import jax.numpy as jnp
from jax.experimental import pallas as pl
from jax.experimental.pallas import tpu as pltpu


def _bmal_kernel(x_ref, a_ref, b_ref, out_ref, *, lane_tiles, assume_unit_interval):
    """Mask-free per-tile partial sum of the log terms, folded to (1, 8, 128).

    x_ref : (TILE_N, C_pad) cosine logits (native dtype; upcast here)
    a_ref : (TILE_N, 1)  cos(margin) for positive rows, -1 for negative rows
    b_ref : (TILE_N, 1)  sin(margin) for positive rows,  0 for negative rows
    """
    x = x_ref[...].astype(jnp.float32)
    a = a_ref[...].astype(jnp.float32)
    b = b_ref[...].astype(jnp.float32)

    # cos(theta)
    c = x if assume_unit_interval else jnp.clip(x, -1.0, 1.0)
    # sin(theta) = sqrt(1 - c^2) >= 0 since theta = acos(c) in [0, pi]
    s = jnp.sqrt(jnp.maximum(1.0 - c * c, 0.0))
    # label==1: z = cos(theta+m) = c*cos(m) - s*sin(m)   (a=cos m, b=sin m)
    # label==0: z = -c            = c*(-1)   - s*0       (a=-1,    b=0)
    z = c * a - s * b
    # fused, stable log-sigmoid: log(sigmoid(z)) = min(z,0) - log(1 + exp(-|z|))
    # (log1p form is marginally more accurate; plain log kept for guaranteed
    #  Mosaic lowering — difference is ~1e-7 absolute.)
    loss_el = jnp.minimum(z, 0.0) - jnp.log(1.0 + jnp.exp(-jnp.abs(z)))

    tile_rows, c_pad = loss_el.shape
    # Sublane fold: groups of 8 rows align exactly with native (8,128) vreg
    # tiles, so this reshape is layout-preserving and the leading-axis sum is
    # plain VPU vreg adds (no XLU, no scalar stores).
    folded = jnp.sum(loss_el.reshape(tile_rows // 8, 8, c_pad), axis=0)  # (8, C_pad)
    # Lane fold to (8, 128) using static, vreg-aligned slices (no reshape).
    acc = folded[:, 0:128]
    for t in range(1, lane_tiles):
        acc = acc + folded[:, t * 128:(t + 1) * 128]
    out_ref[...] = acc[None, :, :]


def binary_margin_angular_loss(x, labels, margin, *, tile_n=None,
                               assume_unit_interval=False):
    """x: (N, C) cosine logits; labels: (N,) binary {0,1};
    margin: (N,) per-row angular margin (N(m, std) sample for positive rows)."""
    N, C = x.shape
    c_pad = ((C + 127) // 128) * 128
    itemsize = jnp.dtype(x.dtype).itemsize
    row_align = max(8, 32 // itemsize)          # 8 rows for f32, 16 for bf16 packing

    if tile_n is None:
        # ~2M elements per x buffer (≈8 MiB f32 / 4 MiB bf16): double-buffered
        # input + f32 intermediates stay well under the 48 MiB scoped limit set
        # below (v7x has only 64 MiB VMEM per TensorCore).
        budget_elems = 2 * 1024 * 1024
        tile_n = budget_elems // c_pad
        tile_n = max(row_align, min(8192, (tile_n // row_align) * row_align))
        # Keep >= ~4 grid steps when the batch allows it (v7x megacore split and
        # pipeline warm-up); tiny batches collapse to a single tile.
        quarter = -(-N // 4)
        quarter = ((quarter + row_align - 1) // row_align) * row_align
        tile_n = min(tile_n, max(row_align, quarter))
    else:
        tile_n = max(row_align, (tile_n // row_align) * row_align)
        n_ceil = ((N + row_align - 1) // row_align) * row_align
        tile_n = min(tile_n, n_ceil)

    n_pad = ((N + tile_n - 1) // tile_n) * tile_n
    num_tiles = n_pad // tile_n
    lane_tiles = c_pad // 128

    # Fold the label branch into per-row coefficients (wrapper-side, exact even
    # if a caller passes nonzero margins for label-0 rows).
    pos = labels.reshape(N) != 0
    marg = margin.reshape(N).astype(jnp.float32)
    a = jnp.where(pos, jnp.cos(marg), -1.0).astype(jnp.float32).reshape(N, 1)
    b = jnp.where(pos, jnp.sin(marg), 0.0).astype(jnp.float32).reshape(N, 1)

    # Zero-pad: padded x rows/cols give analytically-known contributions that
    # are removed in the epilogue (kernel itself runs mask-free).
    x_p = x if (n_pad == N and c_pad == C) else jnp.pad(x, ((0, n_pad - N), (0, c_pad - C)))
    a_p = a if n_pad == N else jnp.pad(a, ((0, n_pad - N), (0, 0)))
    b_p = b if n_pad == N else jnp.pad(b, ((0, n_pad - N), (0, 0)))

    kernel = functools.partial(_bmal_kernel, lane_tiles=lane_tiles,
                               assume_unit_interval=assume_unit_interval)
    partials = pl.pallas_call(
        kernel,
        out_shape=jax.ShapeDtypeStruct((num_tiles, 8, 128), jnp.float32),
        grid=(num_tiles,),
        in_specs=[
            pl.BlockSpec((tile_n, c_pad), lambda i: (i, 0)),   # x (native dtype)
            pl.BlockSpec((tile_n, 1), lambda i: (i, 0)),       # a = cos(m) / -1
            pl.BlockSpec((tile_n, 1), lambda i: (i, 0)),       # b = sin(m) /  0
        ],
        out_specs=pl.BlockSpec((1, 8, 128), lambda i: (i, 0, 0)),
        compiler_params=pltpu.CompilerParams(
            dimension_semantics=("parallel",),
            vmem_limit_bytes=48 * 1024 * 1024),
    )(x_p, a_p, b_p)

    total = jnp.sum(partials)

    # Analytic padding corrections (mirror the kernel's formulas exactly).
    if c_pad != C:
        # Pad columns within real rows: x=0 -> c=0, s=1 -> z = -b_i per row.
        zp = -b[:, 0]
        ls = jnp.minimum(zp, 0.0) - jnp.log(1.0 + jnp.exp(-jnp.abs(zp)))
        total = total - jnp.float32(c_pad - C) * jnp.sum(ls)
    if n_pad != N:
        # Pad rows: a=b=0, x=0 -> z=0 -> log_sigmoid(0) = -ln(2) over all c_pad cols.
        pad_row_contrib = jnp.float32((n_pad - N) * c_pad) * jnp.float32(-math.log(2.0))
        total = total - pad_row_contrib

    # Divide by the TRUE element count (exact Python float before the f32 cast).
    return -(total / jnp.float32(float(N) * float(C)))


def _reference(x, labels, margin):
    """Pure-JAX reference mirroring the PyTorch forward (same sampled margins)."""
    c = jnp.clip(x.astype(jnp.float32), -1.0, 1.0)
    theta = jnp.arccos(c)
    theta_pos = theta + margin[:, None].astype(jnp.float32)
    pos = jax.nn.sigmoid(jnp.cos(theta_pos))
    neg = jax.nn.sigmoid(jnp.cos(theta))
    lab = labels[:, None].astype(jnp.float32)
    L = lab * jnp.log(pos) + (1.0 - lab) * jnp.log(1.0 - neg)
    return -jnp.mean(L)


if __name__ == "__main__":
    m, std = 0.5, 0.05              # module defaults
    keys = jax.random.split(jax.random.PRNGKey(0), 3)

    def make_inputs(key, n, c, dtype=jnp.float32):
        kx, kl, km = jax.random.split(key, 3)
        xx = jax.random.uniform(kx, (n, c), minval=-1.2, maxval=1.2,
                                dtype=jnp.float32).astype(dtype)
        ll = (jax.random.uniform(kl, (n,)) > 0.5).astype(jnp.float32)
        raw = m + std * jax.random.normal(km, (n,), dtype=jnp.float32)
        # torch.normal(mean=m, std=std) per positive row, zero otherwise (== m_hot row)
        mm = jnp.where(ll != 0, raw, 0.0).astype(jnp.float32)
        return xx, ll, mm

    # 1) small batch consistent with the module: 8 rows, 32 cosine logits
    x1, l1, m1 = make_inputs(keys[0], 8, 32)
    out1 = binary_margin_angular_loss(x1, l1, m1)
    jax.block_until_ready(out1)
    ref1 = _reference(x1, l1, m1)
    assert jnp.allclose(out1, ref1, atol=2e-3, rtol=2e-3), (out1, ref1)

    # 2) ragged rows+cols with an explicit small tile: multiple grid steps,
    #    both pad-row and pad-column analytic corrections exercised
    x2, l2, m2 = make_inputs(keys[1], 37, 200)
    out2 = binary_margin_angular_loss(x2, l2, m2, tile_n=16)
    jax.block_until_ready(out2)
    ref2 = _reference(x2, l2, m2)
    assert jnp.allclose(out2, ref2, atol=2e-3, rtol=2e-3), (out2, ref2)

    # 3) bf16 input: 16-row tile alignment, auto tile heuristic (4 grid steps),
    #    lane fold over 3 lane-tiles, bf16 on the wire / f32 in-kernel
    x3, l3, m3 = make_inputs(keys[2], 300, 384, dtype=jnp.bfloat16)
    out3 = binary_margin_angular_loss(x3, l3, m3)
    jax.block_until_ready(out3)
    ref3 = _reference(x3, l3, m3)
    assert jnp.allclose(out3, ref3, atol=2e-3, rtol=2e-3), (out3, ref3)

    print("KERNEL_OK")
</pallas_src>

<mosaic_0001>
module attributes {stable_mosaic.version = 11 : i64} {
  func.func @_bmal_kernel(%arg0: i32, %arg1: memref<8x128xf32, #tpu.memory_space<vmem>>, %arg2: memref<8x1xf32, #tpu.memory_space<vmem>>, %arg3: memref<8x1xf32, #tpu.memory_space<vmem>>, %arg4: memref<1x8x128xf32, #tpu.memory_space<vmem>>) attributes {dimension_semantics = [#tpu.dimension_semantics<parallel>], iteration_bounds = array<i64: 1>, scalar_prefetch = 0 : i64, scratch_operands = 0 : i64, tpu.core_type = #tpu.core_type<tc>, window_params = [{transform_indices = @transform_0, window_bounds = array<i64: 8, 128>}, {transform_indices = @transform_1, window_bounds = array<i64: 8, 1>}, {transform_indices = @transform_2, window_bounds = array<i64: 8, 1>}, {transform_indices = @transform_3, window_bounds = array<i64: 1, 8, 128>}]} {
    %c0 = arith.constant 0 : index
    %c0_0 = arith.constant 0 : index
    %0 = vector.load %arg1[%c0, %c0_0] : memref<8x128xf32, #tpu.memory_space<vmem>>, vector<8x128xf32>
    %c0_1 = arith.constant 0 : index
    %c0_2 = arith.constant 0 : index
    %1 = vector.load %arg2[%c0_1, %c0_2] : memref<8x1xf32, #tpu.memory_space<vmem>>, vector<8x1xf32>
    %c0_3 = arith.constant 0 : index
    %c0_4 = arith.constant 0 : index
    %2 = vector.load %arg3[%c0_3, %c0_4] : memref<8x1xf32, #tpu.memory_space<vmem>>, vector<8x1xf32>
    %cst = arith.constant -1.000000e+00 : f32
    %cst_5 = arith.constant 1.000000e+00 : f32
    %3 = vector.broadcast %cst : f32 to vector<8x128xf32>
    %4 = arith.maximumf %3, %0 : vector<8x128xf32>
    %5 = vector.broadcast %cst_5 : f32 to vector<8x128xf32>
    %6 = arith.minimumf %5, %4 : vector<8x128xf32>
    %7 = arith.mulf %6, %6 : vector<8x128xf32>
    %cst_6 = arith.constant 1.000000e+00 : f32
    %8 = vector.broadcast %cst_6 : f32 to vector<8x128xf32>
    %9 = arith.subf %8, %7 : vector<8x128xf32>
    %cst_7 = arith.constant 0.000000e+00 : f32
    %10 = vector.broadcast %cst_7 : f32 to vector<8x128xf32>
    %11 = arith.maximumf %9, %10 : vector<8x128xf32>
    %12 = math.sqrt %11 : vector<8x128xf32>
    %13 = vector.broadcast %1 : vector<8x1xf32> to vector<8x128xf32>
    %14 = arith.mulf %6, %13 : vector<8x128xf32>
    %15 = vector.broadcast %2 : vector<8x1xf32> to vector<8x128xf32>
    %16 = arith.mulf %12, %15 : vector<8x128xf32>
    %17 = arith.subf %14, %16 : vector<8x128xf32>
    %cst_8 = arith.constant 0.000000e+00 : f32
    %18 = vector.broadcast %cst_8 : f32 to vector<8x128xf32>
    %19 = arith.minimumf %17, %18 : vector<8x128xf32>
    %20 = math.absf %17 : vector<8x128xf32>
    %cst_9 = arith.constant 0.000000e+00 : f32
    %21 = vector.broadcast %cst_9 : f32 to vector<8x128xf32>
    %22 = arith.subf %21, %20 : vector<8x128xf32>
    %23 = math.exp %22 : vector<8x128xf32>
    %cst_10 = arith.constant 1.000000e+00 : f32
    %24 = vector.broadcast %cst_10 : f32 to vector<8x128xf32>
    %25 = arith.addf %24, %23 : vector<8x128xf32>
    %26 = math.log %25 : vector<8x128xf32>
    %27 = arith.subf %19, %26 : vector<8x128xf32>
    %28 = vector.shape_cast %27 : vector<8x128xf32> to vector<1x8x128xf32>
    %cst_11 = arith.constant dense<0.000000e+00> : vector<8x128xf32>
    %29 = vector.multi_reduction <add>, %28, %cst_11 [0] : vector<1x8x128xf32> to vector<8x128xf32>
    %30 = vector.shape_cast %29 : vector<8x128xf32> to vector<1x8x128xf32>
    %c0_12 = arith.constant 0 : index
    %c0_13 = arith.constant 0 : index
    %c0_14 = arith.constant 0 : index
    %31 = vector.load %arg4[%c0_12, %c0_13, %c0_14] : memref<1x8x128xf32, #tpu.memory_space<vmem>>, vector<1x8x128xf32>
    tpu.vector_store %arg4[%c0_12, %c0_13, %c0_14], %30 {strides = array<i32>} : memref<1x8x128xf32, #tpu.memory_space<vmem>>, vector<1x8x128xf32>,
    return
  }
  func.func @transform_0(%arg0: i32) -> (i32, i32) {
    %c0_i32 = arith.constant 0 : i32
    %c0_i32_0 = arith.constant 0 : i32
    return %arg0, %c0_i32 : i32, i32
  }
  func.func @transform_1(%arg0: i32) -> (i32, i32) {
    %c0_i32 = arith.constant 0 : i32
    %c0_i32_0 = arith.constant 0 : i32
    return %arg0, %c0_i32 : i32, i32
  }
  func.func @transform_2(%arg0: i32) -> (i32, i32) {
    %c0_i32 = arith.constant 0 : i32
    %c0_i32_0 = arith.constant 0 : i32
    return %arg0, %c0_i32 : i32, i32
  }
  func.func @transform_3(%arg0: i32) -> (i32, i32, i32) {
    %c0_i32 = arith.constant 0 : i32
    %c0_i32_0 = arith.constant 0 : i32
    %c0_i32_1 = arith.constant 0 : i32
    return %arg0, %c0_i32, %c0_i32_0 : i32, i32, i32
  }
}

</mosaic_0001>

<bundles_post_ra>
// kernel: tpu_custom_call.1
= control target key start
LH: loop header
LB: loop body
LE: loop exit
PB: predicated region body
PF: predicated region fallthrough
CT: control target
= control target key end

     0   :  { %s145_s0 = inlined_call_operand.vmem [shape: f32[8,128], index: 0, kind: input, shape index: {}]   ;;  %s146_s1 = inlined_call_operand.vmem [shape: f32[8,1], index: 1, kind: input, shape index: {}]   ;;  %s147_s2 = inlined_call_operand.vmem [shape: f32[8,1], index: 2, kind: input, shape index: {}]   ;;  %s148_s3 = inlined_call_operand.hbm [shape: f32[1,8,128], index: 3, kind: output, shape index: {}]  }
   0x1   :  { %v16_v0 = vld [vmem:[%s146_s1] sm:$0xff] }
   0x2   :  { %8 = vsyncpa [#allocation3], 0  ;;  %v111_v1 = vmov 0   ;;  %v17_v2 = vld [vmem:[%s147_s2] sm:$0xff]  ;;  %s66_s19 = sshll.u32 %s148_s3, 4  ;;  %s67_s19 = int_to_ptr.hbm [resolvable:$true] %s66_s19 }
   0x3   :  { %78 = vset.pattern.permute.xlu0 %v111_v1  ;;  %v15_v3 = vld [vmem:[%s145_s0] sm:$0xff]  ;;  %s112_s0 = smov [#allocation2]  }
   0x4   :  { %37 = vperm.xlu0 %78, %v16_v0   ;;  %v75_v4 = vclamps-f32 %v15_v3, 1.0  ;;  %s64_s1 = sshll.u32 %s112_s0, 4  ;;  %s65_s1 = int_to_ptr.vmem [resolvable:$true] %s64_s1 }
   0x6   :  { %v20_v5 = vmul.f32 %v75_v4, %v75_v4 }
   0x8   :  { %v21_v6 = vsub.f32 1.0, %v20_v5 }
   0xa   :  { %v22_v7 = vmax.f32 %v21_v6, 0.0 }
   0xc   :  { %43 = vperm.xlu0 %78, %v17_v2   ;;  %79 = vrsqrt.f32 %v22_v7  ;;  %vm30_vm0 = vcmp.eq.f32.partialorder %v22_v7, inf  ;;  %v33_v16 = vand.u32 2147483648, %v22_v7  ;;  %vm32_vm1 = vcmp.eq.f32.partialorder %v22_v7, 0.0 }
  0x12   :  { %v80_v8 = vpop.eup %79 }
  0x13   :  { %v24_v9 = vmul.f32 %v80_v8, %v22_v7 }
  0x15   :  { %v25_v10 = vmul.f32 %v80_v8, %v24_v9 }
  0x17   :  { %v26_v11 = vmul.f32 0.5, %v25_v10 }
  0x19   :  { %v27_v12 = vsub.f32 1.5, %v26_v11 }
  0x1b   :  { %v28_v13 = vmul.f32 %v80_v8, %v27_v12 }
  0x1d   :  { %v29_v14 = vmul.f32 %v28_v13, %v22_v7 }
  0x1f   :  { %v31_v17 = vsel %vm30_vm0, %v22_v7, %v29_v14 }
  0x20   :  { %v34_v18 = vsel %vm32_vm1, %v33_v16, %v31_v17 }
  0x76   :  { %v38_v15 = vpop.permute.xlu0 %37 }
  0x77   :  { %v40_v20 = vmul.f32 %v75_v4, %v38_v15 }
  0x7e   :  { %v44_v19 = vpop.permute.xlu0 %43 }
  0x7f   :  { %v46_v21 = vmul.f32 %v44_v19, %v34_v18 }
  0x81   :  { %v47_v22 = vsub.f32 %v40_v20, %v46_v21 }
  0x83   :  { %v49_v23 = vand.u32 2147483647, %v47_v22  ;;  %v48_v29 = vmin.f32 %v47_v22, 0.0 }
  0x85   :  { %v50_v24 = vsub.f32 0.0, %v49_v23 }
  0x87   :  { %v51_v25 = vmul.f32 1.442695, %v50_v24 }
  0x89   :  { %81 = vpow2.f32 %v51_v25 }
  0x8f   :  { %v82_v26 = vpop.eup %81 }
  0x90   :  { %v53_v27 = vadd.f32 1.0, %v82_v26 }
  0x92   :  { %83 = vlog2.f32 %v53_v27 }
  0x98   :  { %v84_v28 = vpop.eup %83 }
  0x99   :  { %v55_v30 = vmul.f32 0.6931472, %v84_v28 }
  0x9b   :  { %v56_v31 = vsub.f32 %v48_v29, %v55_v30 }
  0x9d   :  { %58 = vst [vmem:[#allocation2] sm:$0xff] %v56_v31 }
  0x9e   :  { %69 = dma.vmem_to_hbm [thread:$0]  %s65_s1, 128, %s67_s19, [#allocation3]  }
  0x9f   :  { %109 = dma.done.wait [#allocation3], 128  }
  0xa0   :  { %110 = vsyncadd [#allocation3], 4294967168 }
  0xa1   :  { %74 = vsyncpa [#allocation3], 1 }

</bundles_post_ra>
